<compile_context>
chip_gen: v7x
topology: tpu7x:2x2x1
jax: 0.10.0
libtpu: 0.0.40
codegen_flags: <defaults>
</compile_context>

<pallas_src>
import math
import functools

import jax
import jax.numpy as jnp
from jax.experimental import pallas as pl
from jax.experimental.pallas import tpu as pltpu


def make_positional_encoding_table(max_len, d_model, dtype=jnp.float32):
    """Deterministic pe buffer, same math as the PyTorch __init__ (d_model even)."""
    assert d_model % 2 == 0, "d_model must be even (same constraint as the PyTorch module)"
    position = jnp.arange(max_len, dtype=jnp.float32)[:, None]            # (L, 1)
    div_term = jnp.exp(jnp.arange(0, d_model, 2, dtype=jnp.float32)
                       * (-math.log(10000.0) / d_model))                  # (D/2,)
    pe = jnp.zeros((max_len, d_model), jnp.float32)
    pe = pe.at[:, 0::2].set(jnp.sin(position * div_term))
    pe = pe.at[:, 1::2].set(jnp.cos(position * div_term))
    return pe.astype(dtype)                                               # (L, D)


def _choose_seq_tile(S, row_bytes, budget_bytes=4 * 1024 * 1024):
    """Largest seq tile (multiple of 8, or S itself if S <= 8) with the x/out
    block under ~4 MiB, so double-buffered x + out + pe stays well inside the
    32 MiB scoped VMEM of v7x (and trivially inside v5e/v6e)."""
    if S <= 8:
        return S
    rows = min(S, max(8, budget_bytes // max(1, row_bytes)))
    return max(8, (rows // 8) * 8)


def _pe_dropout_kernel(seed_ref, x_ref, pe_ref, out_ref, *, p, training, batch):
    x = x_ref[...]                              # (TS, batch*d_model), lane-dense
    pe = pe_ref[...].astype(x.dtype)            # (TS, d_model)
    if batch > 1:
        # Broadcast over the batch axis = tile along lanes; stays in VMEM,
        # HBM read of pe remains only S*D.
        pe = jnp.tile(pe, (1, batch))           # (TS, batch*d_model)
    y = x + pe

    if training and p > 0.0:
        # nn.Dropout(train): zero with prob p, scale survivors by 1/(1-p).
        # Stateless counter hash (lowbias32-style): unique per element,
        # grid-invariant (global row index includes program_id), integer
        # threshold compare -> no float converts.  Matches PyTorch dropout in
        # distribution (bitwise RNG equality is impossible anyway).
        ts, bd = y.shape
        row = jax.lax.broadcasted_iota(jnp.int32, (ts, bd), 0)
        col = jax.lax.broadcasted_iota(jnp.int32, (ts, bd), 1)
        grow = row + pl.program_id(0) * ts                      # global seq row
        idx = (grow * bd + col).astype(jnp.uint32)              # unique element counter
        h = idx * jnp.uint32(0x9E3779B9)
        h = h ^ (seed_ref[0].astype(jnp.uint32) * jnp.uint32(0x85EBCA6B))
        h = h ^ (h >> 16)
        h = h * jnp.uint32(0x7FEB352D)
        h = h ^ (h >> 15)
        h = h * jnp.uint32(0x846CA68B)
        h = h ^ (h >> 16)
        r24 = (h >> 8).astype(jnp.int32)                        # uniform in [0, 2^24)
        thresh = jnp.int32(int(round(p * (1 << 24))))
        keep = r24 >= thresh                                    # P(drop) ~= p
        y = jnp.where(keep, y * (1.0 / (1.0 - p)), 0.0)

    out_ref[...] = y.astype(out_ref.dtype)


def positional_encoding(x, pe_table, *, p=0.1, training=False, seed=0):
    """x: (seq_len, batch, d_model); pe_table: (max_len, d_model)."""
    S, B, D = x.shape
    assert pe_table.shape[0] >= S and pe_table.shape[1] == D
    if training:
        assert 0.0 <= p < 1.0

    BD = B * D
    x2 = x.reshape(S, BD)                       # zero-copy reshape: lane-dense 2-D view
    itemsize = jnp.dtype(x.dtype).itemsize
    ts = _choose_seq_tile(S, BD * itemsize)
    grid = (pl.cdiv(S, ts),)

    seed_arr = jnp.asarray([seed], dtype=jnp.int32)
    kernel = functools.partial(_pe_dropout_kernel, p=float(p),
                               training=bool(training), batch=B)

    out2 = pl.pallas_call(
        kernel,
        out_shape=jax.ShapeDtypeStruct((S, BD), x.dtype),
        grid_spec=pltpu.PrefetchScalarGridSpec(
            num_scalar_prefetch=1,              # seed lands in SMEM
            grid=grid,
            in_specs=[pl.BlockSpec((ts, BD), lambda i, seed: (i, 0)),
                      pl.BlockSpec((ts, D), lambda i, seed: (i, 0))],  # rows straight from pe_table
            out_specs=pl.BlockSpec((ts, BD), lambda i, seed: (i, 0)),
        ),
        compiler_params=pltpu.CompilerParams(
            dimension_semantics=("parallel",),  # independent tiles -> both v7x TCs
            vmem_limit_bytes=32 * 1024 * 1024,
        ),
    )(seed_arr, x2, pe_table)
    return out2.reshape(S, B, D)


if __name__ == "__main__":
    key = jax.random.PRNGKey(0)
    seq_len, batch, d_model = 8, 2, 32
    x = jax.random.normal(key, (seq_len, batch, d_model), dtype=jnp.float32)
    pe_table = make_positional_encoding_table(max_len=64, d_model=d_model)

    ref = x + pe_table[:seq_len][:, None, :]

    # Eval mode (dropout == identity): verify against plain-JAX reference.
    y_eval = jax.block_until_ready(
        positional_encoding(x, pe_table, p=0.1, training=False))
    assert y_eval.shape == (seq_len, batch, d_model)
    assert jnp.allclose(y_eval, ref, atol=1e-6), "mismatch vs reference (eval)"

    # Training mode (inverted dropout with stateless in-kernel hash RNG).
    p = 0.1
    y_train = jax.block_until_ready(
        positional_encoding(x, pe_table, p=p, training=True, seed=1234))
    assert y_train.shape == (seq_len, batch, d_model)
    scale = 1.0 / (1.0 - p)
    kept_ok = jnp.where(y_train == 0.0, True,
                        jnp.isclose(y_train, ref * scale, atol=1e-5, rtol=1e-5))
    assert bool(kept_ok.all()), "kept elements must equal (x + pe) / (1 - p)"
    drop_frac = float(jnp.mean((y_train == 0.0).astype(jnp.float32)))
    assert 0.0 < drop_frac < 0.4, f"implausible drop fraction {drop_frac}"

    print("KERNEL_OK")
</pallas_src>

<mosaic_0001>
module attributes {stable_mosaic.version = 11 : i64} {
  func.func @_pe_dropout_kernel(%arg0: i32, %arg1: memref<1xi32, #tpu.memory_space<smem>>, %arg2: memref<8x64xf32, #tpu.memory_space<vmem>>, %arg3: memref<8x32xf32, #tpu.memory_space<vmem>>, %arg4: memref<8x64xf32, #tpu.memory_space<vmem>>) attributes {dimension_semantics = [#tpu.dimension_semantics<parallel>], iteration_bounds = array<i64: 1>, scalar_prefetch = 1 : i64, scratch_operands = 0 : i64, tpu.core_type = #tpu.core_type<tc>, window_params = [{transform_indices = @transform_0, window_bounds = array<i64: 8, 64>}, {transform_indices = @transform_1, window_bounds = array<i64: 8, 32>}, {transform_indices = @transform_2, window_bounds = array<i64: 8, 64>}]} {
    %c0 = arith.constant 0 : index
    %c0_0 = arith.constant 0 : index
    %0 = vector.load %arg2[%c0, %c0_0] : memref<8x64xf32, #tpu.memory_space<vmem>>, vector<8x64xf32>
    %c0_1 = arith.constant 0 : index
    %c0_2 = arith.constant 0 : index
    %1 = vector.load %arg3[%c0_1, %c0_2] : memref<8x32xf32, #tpu.memory_space<vmem>>, vector<8x32xf32>
    %2 = tpu.concatenate %1, %1 in 1 : vector<8x32xf32>, vector<8x32xf32> -> vector<8x64xf32>
    %3 = arith.addf %0, %2 : vector<8x64xf32>
    %c0_3 = arith.constant 0 : index
    %c0_4 = arith.constant 0 : index
    %4 = vector.load %arg4[%c0_3, %c0_4] : memref<8x64xf32, #tpu.memory_space<vmem>>, vector<8x64xf32>
    tpu.vector_store %arg4[%c0_3, %c0_4], %3 {strides = array<i32>} : memref<8x64xf32, #tpu.memory_space<vmem>>, vector<8x64xf32>,
    return
  }
  func.func @transform_0(%arg0: i32, %arg1: memref<1xi32, #tpu.memory_space<smem>>) -> (i32, i32) {
    %c0_i32 = arith.constant 0 : i32
    %c0_i32_0 = arith.constant 0 : i32
    return %arg0, %c0_i32 : i32, i32
  }
  func.func @transform_1(%arg0: i32, %arg1: memref<1xi32, #tpu.memory_space<smem>>) -> (i32, i32) {
    %c0_i32 = arith.constant 0 : i32
    %c0_i32_0 = arith.constant 0 : i32
    return %arg0, %c0_i32 : i32, i32
  }
  func.func @transform_2(%arg0: i32, %arg1: memref<1xi32, #tpu.memory_space<smem>>) -> (i32, i32) {
    %c0_i32 = arith.constant 0 : i32
    %c0_i32_0 = arith.constant 0 : i32
    return %arg0, %c0_i32 : i32, i32
  }
}

</mosaic_0001>

<bundles_post_ra>
// kernel: tpu_custom_call.1
= control target key start
LH: loop header
LB: loop body
LE: loop exit
PB: predicated region body
PF: predicated region fallthrough
CT: control target
= control target key end

     0   :  { %s105_s0 = inlined_call_operand.<no memory space> [shape: s32[1], index: 0, kind: input, shape index: {}]   ;;  %s106_s1 = inlined_call_operand.vmem [shape: f32[8,64], index: 1, kind: input, shape index: {}]   ;;  %s107_s2 = inlined_call_operand.vmem [shape: f32[64,32], index: 2, kind: input, shape index: {}]   ;;  %s108_s3 = inlined_call_operand.hbm [shape: f32[8,64], index: 3, kind: output, shape index: {}]  }
   0x1   :  { %v15_v0 = vld [vmem:[%s107_s2] sm:$0xff] }
   0x2   :  { %9 = vsyncpa [#allocation5], 0  ;;  %s65_s14 = smov 32   ;;  %vm20_vm0 = vcmask 261120   ;;  %v14_v1 = vld [vmem:[%s106_s1] sm:$0xff]  ;;  %s66_s0 = smov [#allocation4]  }
   0x3   :  { %17 = vrot.lane.b32.xlu0 %v15_v0, %s65_s14  ;;  %s31_s17 = sshll.u32 %s66_s0, 4  ;;  %vm23_vm1 = vcmask 523264   ;;  %s32_s17 = int_to_ptr.vmem [resolvable:$true] %s31_s17 }
   0x4   :  { %s41_s18 = scalar_lea.vmem %s32_s17, 128  ;;  %p46_p1 = scmp.lt.s32.totalorder %s32_s17, %s32_s17 }
   0x5   :  { %p42_p0 = scmp.ne.s32.totalorder %s32_s17, %s41_s18  ;;  %p47_p2 = scmp.lt.s32.totalorder %s41_s18, %s41_s18 }
   0x7   :  { %p48_p3 = por %p47_p2, %p46_p1 }
   0x9   :  { %p49_p4 = pnand %p48_p3, %p42_p0 }
  0x75   :  { %v18_v2 = vpop.permute.xlu0 %17 }
  0x76   :  { %v21_v3 = vsel %vm20_vm0, %v15_v0, %v18_v2 }
  0x77   :  { %v22_v4 = vadd.f32 %v21_v3, %v14_v1 }
  0x79   :  { %24 = vst.msk [vmem:[#allocation4] sm:$0xff] %vm23_vm1, %v22_v4 }
  0x7a   :  { %52 = shalt.err (!%p49_p4)
}
  0x7b   :  { %s53_s20 = scalar_lea.hbm %s108_s3, 128 }
  0x7c   :  { %p54_p5 = scmp.ne.s32.totalorder %s108_s3, %s53_s20  ;;  %p57_p6 = scmp.lt.u32.totalorder %s53_s20, %s108_s3 }
  0x7e   :  { %p59_p7 = pnand %p57_p6, %p54_p5 }
  0x80   :  { %62 = shalt.err (!%p59_p7)
}
  0x81   :  { %34 = dma.vmem_to_hbm [thread:$0]  %s32_s17, 128, %s108_s3, [#allocation5]  }
  0x82   :  { %63 = dma.done.wait [#allocation5], 128  }
  0x83   :  { %64 = vsyncadd [#allocation5], 4294967168 }
  0x84   :  { %38 = vsyncpa [#allocation5], 1 }

</bundles_post_ra>
